<compile_context>
chip_gen: v7x
topology: tpu7x:2x2x1
jax: 0.10.0
libtpu: 0.0.40
codegen_flags: <defaults>
</compile_context>

<pallas_src>
import functools

import jax
import jax.numpy as jnp
from jax.experimental import pallas as pl
from jax.experimental.pallas import tpu as pltpu

_VMEM_TILE_BUDGET = 8 * 1024 * 1024   # target double-buffered working set


# ---------------------------------------------------------------------------
# Kernels
# ---------------------------------------------------------------------------
def _pe_add_kernel(x_ref, pe_ref, o_ref):
    # pe_ref either matches x_ref's block shape (flattened path) or is
    # (ts, 1, D) against (ts, B, D) (3-D path) -> jnp broadcasting handles both.
    o_ref[...] = x_ref[...] + pe_ref[...]


def _pe_add_dropout_kernel(x_ref, pe_ref, bits_ref, o_ref, *,
                           keep_threshold, inv_keep_prob):
    # Inverted dropout: keep with prob (1 - p), scale kept values by 1/(1-p).
    y = x_ref[...] + pe_ref[...]
    keep = bits_ref[...] < jnp.uint32(keep_threshold)
    o_ref[...] = jnp.where(keep, y * inv_keep_prob,
                           jnp.zeros_like(y)).astype(o_ref.dtype)


# ---------------------------------------------------------------------------
# Tiling helpers
# ---------------------------------------------------------------------------
def _choose_cols(total, natural_last):
    # Prefer a lane-dense (multiple-of-128) last block dim; otherwise fall back
    # to the array's own last dim (full-extent last dims are always legal).
    for c in (2048, 1024, 512, 256, 128):
        if total % c == 0:
            return c
    return natural_last


def _largest_divisor_leq(n, cap, multiple=1):
    # Largest divisor of n that is <= cap and a multiple of `multiple`.
    cap = max(cap, multiple)
    t = (min(n, cap) // multiple) * multiple
    while t >= multiple:
        if n % t == 0:
            return t
        t -= multiple
    return None


# ---------------------------------------------------------------------------
# Wrapper
# ---------------------------------------------------------------------------
def learnable_positional_encoding(x, pe, *, dropout_p=0.1, training=False,
                                  rng_key=None):
    """Forward of LearnablePositionalEncoding.

    x : (S, B, D) sequence-first activations.
    pe: (max_len, 1, D) learnable table; rows [0:S] are added (broadcast over B).
    """
    S, B, D = x.shape
    assert pe.shape[0] >= S and pe.shape[1] == 1 and pe.shape[2] == D

    use_dropout = bool(training) and float(dropout_p) > 0.0
    keep_prob = 1.0 - float(dropout_p)
    if use_dropout:
        if rng_key is None:
            rng_key = jax.random.PRNGKey(0)
        keep_threshold = min(int(keep_prob * 4294967296.0), 4294967295)
        kernel = functools.partial(_pe_add_dropout_kernel,
                                   keep_threshold=keep_threshold,
                                   inv_keep_prob=1.0 / keep_prob)
    else:
        kernel = _pe_add_kernel

    compiler_params = pltpu.CompilerParams(
        dimension_semantics=("parallel",),        # independent tiles -> megacore
        vmem_limit_bytes=32 * 1024 * 1024,        # explicit (v5e default is 16 MiB)
    )
    itemsize = x.dtype.itemsize
    bits_bytes = 4 if use_dropout else 0

    # ---- Path A: d_model already lane-dense -> keep the natural 3-D layout,
    # broadcast pe over batch inside the kernel (no extra HBM pe stream).
    if D % 128 == 0:
        pe_s = pe[:S]                                              # (S, 1, D)
        per_s = B * D * (2 * itemsize + bits_bytes) + D * itemsize
        ts = _largest_divisor_leq(S, max(1, _VMEM_TILE_BUDGET // (2 * per_s)))
        ts = ts or S
        grid = (S // ts,)
        xb = pl.BlockSpec((ts, B, D), lambda i: (i, 0, 0))
        pb = pl.BlockSpec((ts, 1, D), lambda i: (i, 0, 0))
        out_shape = jax.ShapeDtypeStruct((S, B, D), x.dtype)
        if use_dropout:
            bits = jax.random.bits(rng_key, (S, B, D), dtype=jnp.uint32)
            return pl.pallas_call(kernel, out_shape=out_shape, grid=grid,
                                  in_specs=[xb, pb, xb], out_specs=xb,
                                  compiler_params=compiler_params)(x, pe_s, bits)
        return pl.pallas_call(kernel, out_shape=out_shape, grid=grid,
                              in_specs=[xb, pb], out_specs=xb,
                              compiler_params=compiler_params)(x, pe_s)

    # ---- Path B: lane-narrow d_model (e.g. 32).  Flatten to a 2-D view with a
    # multiple-of-128 last dim so stores are unmasked full-lane vst; pe is
    # broadcast to x's shape in the wrapper (layout plumbing, extra stream).
    pe_full = jnp.broadcast_to(pe[:S], (S, B, D))
    total = S * B * D
    cols = _choose_cols(total, B * D)
    rows = total // cols
    x2 = x.reshape(rows, cols)            # row-major flatten: free bitcast
    pe2 = pe_full.reshape(rows, cols)

    per_row = cols * (3 * itemsize + bits_bytes)      # x + pe + out (+ bits)
    max_rows = max(8, _VMEM_TILE_BUDGET // (2 * per_row))
    if rows <= max_rows:
        rt = rows
    else:
        rt = _largest_divisor_leq(rows, max_rows, multiple=8) or rows
    grid = (rows // rt,)
    blk = pl.BlockSpec((rt, cols), lambda i: (i, 0))
    out_shape = jax.ShapeDtypeStruct((rows, cols), x.dtype)

    if use_dropout:
        bits = jax.random.bits(rng_key, (rows, cols), dtype=jnp.uint32)
        out2 = pl.pallas_call(kernel, out_shape=out_shape, grid=grid,
                              in_specs=[blk, blk, blk], out_specs=blk,
                              compiler_params=compiler_params)(x2, pe2, bits)
    else:
        out2 = pl.pallas_call(kernel, out_shape=out_shape, grid=grid,
                              in_specs=[blk, blk], out_specs=blk,
                              compiler_params=compiler_params)(x2, pe2)
    return out2.reshape(S, B, D)


# ---------------------------------------------------------------------------
# Self-test
# ---------------------------------------------------------------------------
if __name__ == "__main__":
    # Module config: d_model=32, max_len=1024; input: seq=8, batch=2.
    d_model, max_len = 32, 1024
    S, B = 8, 2

    key = jax.random.PRNGKey(0)
    k_pe, k_x, k_drop, k_pe2, k_x2 = jax.random.split(key, 5)

    # nn.init.uniform_(pe, -0.02, 0.02) — deterministic synthetic init.
    pe = jax.random.uniform(k_pe, (max_len, 1, d_model),
                            minval=-0.02, maxval=0.02, dtype=jnp.float32)
    x = jax.random.normal(k_x, (S, B, d_model), dtype=jnp.float32)
    ref = x + pe[:S]
    keep_prob = 0.9

    # Eval mode (dropout = identity), lane-narrow (flattened) path.
    out = jax.block_until_ready(
        learnable_positional_encoding(x, pe, dropout_p=0.1, training=False))
    assert out.shape == (S, B, d_model)
    assert jnp.allclose(out, ref, atol=1e-6), "eval-mode mismatch vs reference"

    # Training mode: inverted dropout.  Kept elements equal ref/(1-p), dropped
    # elements are exactly zero.
    out_tr = jax.block_until_ready(
        learnable_positional_encoding(x, pe, dropout_p=0.1, training=True,
                                      rng_key=k_drop))
    assert out_tr.shape == (S, B, d_model)
    assert bool(jnp.all(jnp.isfinite(out_tr)))
    survived = out_tr != 0
    assert bool(jnp.allclose(jnp.where(survived, out_tr * keep_prob, ref),
                             ref, atol=1e-5))

    # Also exercise the lane-dense 3-D path (d_model multiple of 128).
    D2 = 128
    pe_b = jax.random.uniform(k_pe2, (max_len, 1, D2),
                              minval=-0.02, maxval=0.02, dtype=jnp.float32)
    x_b = jax.random.normal(k_x2, (S, B, D2), dtype=jnp.float32)
    ref_b = x_b + pe_b[:S]
    out_b = jax.block_until_ready(
        learnable_positional_encoding(x_b, pe_b, dropout_p=0.1, training=False))
    assert jnp.allclose(out_b, ref_b, atol=1e-6), "3-D path mismatch"

    out_b_tr = jax.block_until_ready(
        learnable_positional_encoding(x_b, pe_b, dropout_p=0.1, training=True,
                                      rng_key=k_drop))
    surv_b = out_b_tr != 0
    assert bool(jnp.allclose(jnp.where(surv_b, out_b_tr * keep_prob, ref_b),
                             ref_b, atol=1e-5))

    print("KERNEL_OK")
</pallas_src>

<mosaic_0001>
module attributes {stable_mosaic.version = 11 : i64} {
  func.func @_pe_add_kernel(%arg0: i32, %arg1: memref<1x512xf32, #tpu.memory_space<vmem>>, %arg2: memref<1x512xf32, #tpu.memory_space<vmem>>, %arg3: memref<1x512xf32, #tpu.memory_space<vmem>>) attributes {dimension_semantics = [#tpu.dimension_semantics<parallel>], iteration_bounds = array<i64: 1>, scalar_prefetch = 0 : i64, scratch_operands = 0 : i64, tpu.core_type = #tpu.core_type<tc>, window_params = [{transform_indices = @transform_0, window_bounds = array<i64: 1, 512>}, {transform_indices = @transform_1, window_bounds = array<i64: 1, 512>}, {transform_indices = @transform_2, window_bounds = array<i64: 1, 512>}]} {
    %c0 = arith.constant 0 : index
    %c0_0 = arith.constant 0 : index
    %0 = vector.load %arg1[%c0, %c0_0] : memref<1x512xf32, #tpu.memory_space<vmem>>, vector<1x512xf32>
    %c0_1 = arith.constant 0 : index
    %c0_2 = arith.constant 0 : index
    %1 = vector.load %arg2[%c0_1, %c0_2] : memref<1x512xf32, #tpu.memory_space<vmem>>, vector<1x512xf32>
    %2 = arith.addf %0, %1 : vector<1x512xf32>
    %c0_3 = arith.constant 0 : index
    %c0_4 = arith.constant 0 : index
    %3 = vector.load %arg3[%c0_3, %c0_4] : memref<1x512xf32, #tpu.memory_space<vmem>>, vector<1x512xf32>
    tpu.vector_store %arg3[%c0_3, %c0_4], %2 {strides = array<i32>} : memref<1x512xf32, #tpu.memory_space<vmem>>, vector<1x512xf32>,
    return
  }
  func.func @transform_0(%arg0: i32) -> (i32, i32) {
    %c0_i32 = arith.constant 0 : i32
    %c0_i32_0 = arith.constant 0 : i32
    return %arg0, %c0_i32 : i32, i32
  }
  func.func @transform_1(%arg0: i32) -> (i32, i32) {
    %c0_i32 = arith.constant 0 : i32
    %c0_i32_0 = arith.constant 0 : i32
    return %arg0, %c0_i32 : i32, i32
  }
  func.func @transform_2(%arg0: i32) -> (i32, i32) {
    %c0_i32 = arith.constant 0 : i32
    %c0_i32_0 = arith.constant 0 : i32
    return %arg0, %c0_i32 : i32, i32
  }
}

</mosaic_0001>

<bundles_post_ra>
// kernel: tpu_custom_call.1
= control target key start
LH: loop header
LB: loop body
LE: loop exit
PB: predicated region body
PF: predicated region fallthrough
CT: control target
= control target key end

     0   :  { %7 = vsyncpa [#allocation3], 0  ;;  %s189_s0 = inlined_call_operand.hbm [shape: f32[1,512], index: 0, kind: input, shape index: {}]   ;;  %s190_s1 = inlined_call_operand.hbm [shape: f32[1,512], index: 1, kind: input, shape index: {}]   ;;  %s191_s2 = inlined_call_operand.hbm [shape: f32[1,512], index: 2, kind: output, shape index: {}]  }
   0x1   :  { %8 = vsyncpa [#allocation6], 0 }
   0x2   :  { %9 = vsyncpa [#allocation4], 0  ;;  %s135_s9 = smov [#allocation2]   ;;  %s136_s11 = smov [#allocation5]  }
   0x3   :  { %s16_s10 = sshll.u32 %s135_s9, 4  ;;  %s26_s12 = sshll.u32 %s136_s11, 4  ;;  %s17_s10 = int_to_ptr.vmem [resolvable:$true] %s16_s10  ;;  %s27_s12 = int_to_ptr.vmem [resolvable:$true] %s26_s12 }
   0x4   :  { %s63_s15 = scalar_lea.hbm %s189_s0, 64 }
   0x5   :  { %p64_p0 = scmp.ne.s32.totalorder %s189_s0, %s63_s15  ;;  %p67_p1 = scmp.lt.u32.totalorder %s63_s15, %s189_s0 }
   0x7   :  { %p69_p2 = pnand %p67_p1, %p64_p0 }
   0x9   :  { %72 = shalt.err (!%p69_p2)
}
   0xa   :  { %s73_s20 = scalar_lea.vmem %s17_s10, 64  ;;  %p78_p4 = scmp.lt.s32.totalorder %s17_s10, %s17_s10 }
   0xb   :  { %p74_p3 = scmp.ne.s32.totalorder %s17_s10, %s73_s20  ;;  %p79_p5 = scmp.lt.s32.totalorder %s73_s20, %s73_s20 }
   0xd   :  { %p80_p6 = por %p79_p5, %p78_p4 }
   0xf   :  { %p81_p7 = pnand %p80_p6, %p74_p3 }
  0x11   :  { %84 = shalt.err (!%p81_p7)
}
  0x12   :  { %19 = dma.hbm_to_vmem [thread:$0]  %s189_s0, 64, %s17_s10, [#allocation3]  }
  0x13   :  { %s85_s25 = scalar_lea.hbm %s190_s1, 64 }
  0x14   :  { %p86_p8 = scmp.ne.s32.totalorder %s190_s1, %s85_s25  ;;  %p89_p9 = scmp.lt.u32.totalorder %s85_s25, %s190_s1 }
  0x16   :  { %p91_p10 = pnand %p89_p9, %p86_p8 }
  0x18   :  { %94 = shalt.err (!%p91_p10)
}
  0x19   :  { %s95_s30 = scalar_lea.vmem %s27_s12, 64  ;;  %p100_p12 = scmp.lt.s32.totalorder %s27_s12, %s27_s12 }
  0x1a   :  { %p96_p11 = scmp.ne.s32.totalorder %s27_s12, %s95_s30  ;;  %p101_p13 = scmp.lt.s32.totalorder %s95_s30, %s95_s30 }
  0x1c   :  { %p102_p0 = por %p101_p13, %p100_p12 }
  0x1e   :  { %p103_p1 = pnand %p102_p0, %p96_p11 }
  0x20   :  { %106 = shalt.err (!%p103_p1)
}
  0x21   :  { %29 = dma.hbm_to_vmem [thread:$0]  %s190_s1, 64, %s27_s12, [#allocation6]  }
  0x22   :  { %129 = dma.done.wait [#allocation3], 64  }
  0x23   :  { %130 = vsyncadd [#allocation3], 4294967232 }
  0x24   :  { %131 = dma.done.wait [#allocation6], 64  }
  0x25   :  { %132 = vsyncadd [#allocation6], 4294967232  ;;  %v39_v0 = vlaneseq  ;;  %s137_s4 = smov [#allocation7]   ;;  %v36_v1 = vld [vmem:[#allocation2] sm:$0xf] }
  0x26   :  { %s50_s5 = sshll.u32 %s137_s4, 4  ;;  %v37_v2 = vld [vmem:[#allocation5] sm:$0xf]  ;;  %s51_s5 = int_to_ptr.vmem [resolvable:$true] %s50_s5 }
  0x27   :  { %vm41_vm0 = vcmp.lt.s32.totalorder %v39_v0, 512  ;;  %v38_v3 = vadd.f32 %v37_v2, %v36_v1  ;;  %s107_s6 = scalar_lea.vmem %s51_s5, 64  ;;  %p112_p3 = scmp.lt.s32.totalorder %s51_s5, %s51_s5 }
  0x28   :  { %p108_p2 = scmp.ne.s32.totalorder %s51_s5, %s107_s6  ;;  %p113_p4 = scmp.lt.s32.totalorder %s107_s6, %s107_s6 }
  0x29   :  { %43 = vst.msk [vmem:[#allocation7] sm:$0xf] %vm41_vm0, %v38_v3 }
  0x2a   :  { %p114_p5 = por %p113_p4, %p112_p3 }
  0x2c   :  { %p115_p6 = pnand %p114_p5, %p108_p2 }
  0x2e   :  { %118 = shalt.err (!%p115_p6)
}
  0x2f   :  { %s119_s8 = scalar_lea.hbm %s191_s2, 64 }
  0x30   :  { %p120_p7 = scmp.ne.s32.totalorder %s191_s2, %s119_s8  ;;  %p123_p8 = scmp.lt.u32.totalorder %s119_s8, %s191_s2 }
  0x32   :  { %p125_p9 = pnand %p123_p8, %p120_p7 }
  0x34   :  { %128 = shalt.err (!%p125_p9)
}
  0x35   :  { %53 = dma.vmem_to_hbm [thread:$0]  %s51_s5, 64, %s191_s2, [#allocation4]  }
  0x36   :  { %133 = dma.done.wait [#allocation4], 64  }
  0x37   :  { %134 = vsyncadd [#allocation4], 4294967232 }
  0x38   :  { %57 = vsyncpa [#allocation3], 1 }
  0x39   :  { %58 = vsyncpa [#allocation6], 1 }
  0x3a   :  { %59 = vsyncpa [#allocation4], 1 }

</bundles_post_ra>
